<compile_context>
chip_gen: v5e
topology: v5e:2x2
jax: 0.10.0
libtpu: 0.0.40
codegen_flags: <defaults>
</compile_context>

<pallas_src>
import functools
import math

import jax
import jax.numpy as jnp
from jax.experimental import pallas as pl
from jax.experimental.pallas import tpu as pltpu


def _round_up(x, m):
    return ((x + m - 1) // m) * m


# -----------------------------------------------------------------------------
# Kernel
# -----------------------------------------------------------------------------
def lstm_cell_kernel(x_ref, h_ref, c_ref, wih_ref, whh_ref, b_ref,
                     h_out_ref, c_out_ref, *, hidden_pad):
    """One batch tile of an LSTM cell step.

    x_ref   : (TB, Ip)     input tile (compute dtype)
    h_ref   : (TB, Hp)     previous hidden tile (compute dtype)
    c_ref   : (TB, Hp)     previous cell tile
    wih_ref : (Ip, 4*Hp)   input->gates weights, VMEM-resident
    whh_ref : (Hp, 4*Hp)   hidden->gates weights, VMEM-resident
    b_ref   : (1, 4*Hp)    combined bias (f32); gate g lives in cols [g*Hp,(g+1)*Hp)
    """
    Hp = hidden_pad

    # Two accumulating MXU contractions into one (TB, 4*Hp) f32 pre-activation.
    pre = jnp.dot(x_ref[...], wih_ref[...], preferred_element_type=jnp.float32)
    pre = pre + jnp.dot(h_ref[...], whh_ref[...], preferred_element_type=jnp.float32)
    pre = pre + b_ref[...]

    def sigmoid(z):
        # one EUP tanh per gate instead of exp + divide
        return 0.5 * jnp.tanh(0.5 * z) + 0.5

    # Gate order follows PyTorch: [i, f, g, o]; slices are 128-aligned lane tiles.
    i_g = sigmoid(pre[:, 0 * Hp:1 * Hp])
    f_g = sigmoid(pre[:, 1 * Hp:2 * Hp])
    g_g = jnp.tanh(pre[:, 2 * Hp:3 * Hp])
    o_g = sigmoid(pre[:, 3 * Hp:4 * Hp])

    c_prev = c_ref[...].astype(jnp.float32)
    c_new = f_g * c_prev + i_g * g_g
    h_new = o_g * jnp.tanh(c_new)

    c_out_ref[...] = c_new.astype(c_out_ref.dtype)
    h_out_ref[...] = h_new.astype(h_out_ref.dtype)


# -----------------------------------------------------------------------------
# One-time parameter formatting (hoisted out of the per-step path)
# -----------------------------------------------------------------------------
def prepare_lstm_params(w_ih, w_hh, b, *, compute_dtype=jnp.bfloat16):
    """Pre-format LSTM parameters once.

    w_ih : (I, 4H)  input->hidden weights (gate order [i, f, g, o] along columns)
    w_hh : (H, 4H)  hidden->hidden weights
    b    : (1, 4H)  combined bias b_ih + b_hh

    Gates are re-laid out so gate g occupies columns [g*Hp, g*Hp + H) with
    Hp = round_up(H, 128): every gate slice / output store stays lane-dense.
    """
    I, G4 = w_ih.shape
    H = G4 // 4
    Ip = _round_up(max(I, 8), 8)
    Hp = _round_up(max(H, 128), 128)

    def regate(w, rows_pad):
        rows = w.shape[0]
        w4 = w.reshape(rows, 4, H)
        w4 = jnp.pad(w4, ((0, rows_pad - rows), (0, 0), (0, Hp - H)))
        return w4.reshape(rows_pad, 4 * Hp)

    return {
        "w_ih": regate(w_ih, Ip).astype(compute_dtype),
        "w_hh": regate(w_hh, Hp).astype(compute_dtype),
        "b": regate(b, 1).astype(jnp.float32),
        "dims": (int(I), int(H), int(Ip), int(Hp)),
        "compute_dtype": compute_dtype,
    }


# -----------------------------------------------------------------------------
# VMEM budgeting & batch tiling (generation-aware)
# -----------------------------------------------------------------------------
def _vmem_budget_bytes():
    cap = 64 << 20  # conservative fallback, valid on every generation (v7x physical)
    try:
        info = pltpu.get_tpu_info()
        cap = int(getattr(info, "vmem_capacity_bytes", cap)) or cap
    except Exception:
        pass
    return int(cap * 0.85)  # headroom for compiler-internal scratch


def _working_set_bytes(TB, Ip, Hp, cd_bytes, out_bytes, weight_buffers):
    G = 4 * Hp
    w = (Ip + Hp) * G * cd_bytes + G * 4                 # weights + f32 bias
    acts = 2 * TB * ((Ip + Hp) * cd_bytes + Hp * 4)      # x,h (cd) + c (f32), double-buffered
    outs = 2 * 2 * TB * Hp * out_bytes                   # h,c outputs, double-buffered
    temps = 8 * TB * Hp * 4                              # f32 pre-activation / gates / c / h
    return weight_buffers * w + acts + outs + temps + (2 << 20)


def _choose_batch_tile(B, Ip, Hp, cd_bytes, out_bytes, vmem_cap):
    """TB <= 256; >=2 (even) grid steps for big batches; shrink TB if VMEM-tight."""
    B8 = _round_up(max(B, 8), 8)
    if B8 >= 512:
        TB = 256
    elif B8 >= 256:
        TB = 128
    else:
        TB = B8
    while TB > 8 and _working_set_bytes(TB, Ip, Hp, cd_bytes, out_bytes, 1) > vmem_cap:
        TB = _round_up(TB // 2, 8)
    Bp = _round_up(B8, TB)
    nb = Bp // TB
    if nb > 1 and nb % 2 == 1:   # even step count: no tail step across v7x's 2 TCs
        Bp += TB
        nb += 1
    return TB, Bp, nb


def _pad2d(a, rows, cols, dtype=None):
    out = a
    if dtype is not None and out.dtype != dtype:
        out = out.astype(dtype)
    r, c = out.shape
    if r != rows or c != cols:
        out = jnp.pad(out, ((0, rows - r), (0, cols - c)))
    return out


# -----------------------------------------------------------------------------
# pallas_call builder + user-facing step
# -----------------------------------------------------------------------------
def _lstm_step_call(x_p, h_p, c_p, w_ih, w_hh, b, *, TB, nb, Hp, out_dtypes,
                    vmem_cap, single_buffer_weights):
    Ip = x_p.shape[1]
    G = 4 * Hp
    Bp = nb * TB

    const_kwargs = (dict(pipeline_mode=pl.Buffered(1))
                    if single_buffer_weights else {})

    in_specs = [
        pl.BlockSpec((TB, Ip), lambda i: (i, 0)),                  # x tile streams over batch
        pl.BlockSpec((TB, Hp), lambda i: (i, 0)),                  # h_prev tile
        pl.BlockSpec((TB, Hp), lambda i: (i, 0)),                  # c_prev tile
        pl.BlockSpec((Ip, G), lambda i: (0, 0), **const_kwargs),   # weights: VMEM-resident
        pl.BlockSpec((Hp, G), lambda i: (0, 0), **const_kwargs),
        pl.BlockSpec((1, G), lambda i: (0, 0), **const_kwargs),    # bias: VMEM-resident
    ]
    out_specs = (
        pl.BlockSpec((TB, Hp), lambda i: (i, 0)),
        pl.BlockSpec((TB, Hp), lambda i: (i, 0)),
    )
    out_shape = (
        jax.ShapeDtypeStruct((Bp, Hp), out_dtypes[0]),
        jax.ShapeDtypeStruct((Bp, Hp), out_dtypes[1]),
    )

    cd_bytes = jnp.dtype(x_p.dtype).itemsize
    out_bytes = max(jnp.dtype(d).itemsize for d in out_dtypes)
    need = _working_set_bytes(TB, Ip, Hp, cd_bytes, out_bytes,
                              1 if single_buffer_weights else 2)
    vmem_limit = int(min(max(need, 32 << 20), vmem_cap))

    grid_spec = pltpu.PrefetchScalarGridSpec(
        num_scalar_prefetch=0,
        grid=(nb,),
        in_specs=in_specs,
        out_specs=out_specs,
    )

    return pl.pallas_call(
        functools.partial(lstm_cell_kernel, hidden_pad=Hp),
        out_shape=out_shape,
        grid_spec=grid_spec,
        compiler_params=pltpu.CompilerParams(
            dimension_semantics=("parallel",),   # batch axis shards across v7x's 2 TCs
            vmem_limit_bytes=vmem_limit,
        ),
    )(x_p, h_p, c_p, w_ih, w_hh, b)


def my_lstm_cell(x, h_prev, c_prev, params):
    """Single LSTM cell step (PyTorch nn.LSTMCell forward semantics).

    x: (B, I), h_prev/c_prev: (B, H), params from prepare_lstm_params.
    Returns (h, c) with dtypes following h_prev / c_prev.
    """
    I, H, Ip, Hp = params["dims"]
    assert x.shape[1] == I and h_prev.shape[1] == H and c_prev.shape[1] == H
    B = x.shape[0]
    cd = params["compute_dtype"]

    vmem_cap = _vmem_budget_bytes()
    cd_bytes = jnp.dtype(cd).itemsize
    out_bytes = max(jnp.dtype(h_prev.dtype).itemsize,
                    jnp.dtype(c_prev.dtype).itemsize)
    TB, Bp, nb = _choose_batch_tile(B, Ip, Hp, cd_bytes, out_bytes, vmem_cap)

    x_p = _pad2d(x, Bp, Ip, dtype=cd)
    h_p = _pad2d(h_prev, Bp, Hp, dtype=cd)
    c_p = _pad2d(c_prev, Bp, Hp)            # cell state stays in its own dtype

    kwargs = dict(TB=TB, nb=nb, Hp=Hp,
                  out_dtypes=(h_prev.dtype, c_prev.dtype), vmem_cap=vmem_cap)
    try:
        h_o, c_o = _lstm_step_call(x_p, h_p, c_p, params["w_ih"], params["w_hh"],
                                   params["b"], single_buffer_weights=True, **kwargs)
    except Exception:
        # Fallback if this JAX build rejects Buffered(1) on constant blocks.
        h_o, c_o = _lstm_step_call(x_p, h_p, c_p, params["w_ih"], params["w_hh"],
                                   params["b"], single_buffer_weights=False, **kwargs)

    return h_o[:B, :H], c_o[:B, :H]


# -----------------------------------------------------------------------------
# Pure-JAX reference (standard PyTorch LSTMCell math, gate order i, f, g, o)
# -----------------------------------------------------------------------------
def lstm_cell_ref(x, h_prev, c_prev, w_ih, w_hh, b):
    H = h_prev.shape[1]
    gates = x @ w_ih + h_prev @ w_hh + b
    i_g = jax.nn.sigmoid(gates[:, 0 * H:1 * H])
    f_g = jax.nn.sigmoid(gates[:, 1 * H:2 * H])
    g_g = jnp.tanh(gates[:, 2 * H:3 * H])
    o_g = jax.nn.sigmoid(gates[:, 3 * H:4 * H])
    c = f_g * c_prev + i_g * g_g
    h = o_g * jnp.tanh(c)
    return h, c


if __name__ == "__main__":
    B, I, H = 8, 16, 32            # batch, input_size, hidden_size
    key = jax.random.PRNGKey(0)
    kx, kh, kc, kwi, kwh, kb1, kb2 = jax.random.split(key, 7)

    # PyTorch-default init: U(-stdv, stdv), stdv = 1/sqrt(H)
    stdv = 1.0 / math.sqrt(H)
    w_ih = jax.random.uniform(kwi, (I, 4 * H), jnp.float32, -stdv, stdv)
    w_hh = jax.random.uniform(kwh, (H, 4 * H), jnp.float32, -stdv, stdv)
    b_ih = jax.random.uniform(kb1, (1, 4 * H), jnp.float32, -stdv, stdv)
    b_hh = jax.random.uniform(kb2, (1, 4 * H), jnp.float32, -stdv, stdv)
    b = b_ih + b_hh

    x = jax.random.normal(kx, (B, I), jnp.float32)
    h_prev = jax.random.normal(kh, (B, H), jnp.float32)
    c_prev = jax.random.normal(kc, (B, H), jnp.float32)

    h_gold, c_gold = lstm_cell_ref(x, h_prev, c_prev, w_ih, w_hh, b)

    # Exact-math path (f32 everywhere) -- tight correctness check.
    params_f32 = prepare_lstm_params(w_ih, w_hh, b, compute_dtype=jnp.float32)
    h32, c32 = my_lstm_cell(x, h_prev, c_prev, params_f32)
    jax.block_until_ready((h32, c32))
    assert jnp.allclose(h32, h_gold, atol=1e-5, rtol=1e-5)
    assert jnp.allclose(c32, c_gold, atol=1e-5, rtol=1e-5)

    # Production path (bf16 weights/activations, f32 accumulation + gate math).
    params_bf16 = prepare_lstm_params(w_ih, w_hh, b, compute_dtype=jnp.bfloat16)
    hbf, cbf = my_lstm_cell(x, h_prev, c_prev, params_bf16)
    jax.block_until_ready((hbf, cbf))
    assert jnp.allclose(hbf, h_gold, atol=2e-2, rtol=2e-2)
    assert jnp.allclose(cbf, c_gold, atol=2e-2, rtol=2e-2)

    print("KERNEL_OK")
</pallas_src>

<mosaic_0001>
module attributes {stable_mosaic.version = 11 : i64} {
  func.func @lstm_cell_kernel(%arg0: i32, %arg1: memref<8x16xf32, #tpu.memory_space<vmem>>, %arg2: memref<8x128xf32, #tpu.memory_space<vmem>>, %arg3: memref<8x128xf32, #tpu.memory_space<vmem>>, %arg4: memref<16x512xf32, #tpu.memory_space<vmem>>, %arg5: memref<128x512xf32, #tpu.memory_space<vmem>>, %arg6: memref<1x512xf32, #tpu.memory_space<vmem>>, %arg7: memref<8x128xf32, #tpu.memory_space<vmem>>, %arg8: memref<8x128xf32, #tpu.memory_space<vmem>>) attributes {dimension_semantics = [#tpu.dimension_semantics<parallel>], iteration_bounds = array<i64: 1>, scalar_prefetch = 0 : i64, scratch_operands = 0 : i64, tpu.core_type = #tpu.core_type<tc>, window_params = [{transform_indices = @transform_0, window_bounds = array<i64: 8, 16>}, {transform_indices = @transform_1, window_bounds = array<i64: 8, 128>}, {transform_indices = @transform_2, window_bounds = array<i64: 8, 128>}, {pipeline_mode = #tpu.pipeline_mode<synchronous>, transform_indices = @transform_3, window_bounds = array<i64: 16, 512>}, {pipeline_mode = #tpu.pipeline_mode<synchronous>, transform_indices = @transform_4, window_bounds = array<i64: 128, 512>}, {pipeline_mode = #tpu.pipeline_mode<synchronous>, transform_indices = @transform_5, window_bounds = array<i64: 1, 512>}, {transform_indices = @transform_6, window_bounds = array<i64: 8, 128>}, {transform_indices = @transform_7, window_bounds = array<i64: 8, 128>}]} {
    %c0 = arith.constant 0 : index
    %c0_0 = arith.constant 0 : index
    %0 = vector.load %arg1[%c0, %c0_0] : memref<8x16xf32, #tpu.memory_space<vmem>>, vector<8x16xf32>
    %c0_1 = arith.constant 0 : index
    %c0_2 = arith.constant 0 : index
    %1 = vector.load %arg4[%c0_1, %c0_2] : memref<16x512xf32, #tpu.memory_space<vmem>>, vector<16x512xf32>
    %cst = arith.constant dense<0.000000e+00> : vector<8x512xf32>
    %2 = tpu.matmul %0, %1, %cst {dimension_numbers = #tpu.dot_dimension_numbers<[1], [0], [0], [1], [0, 0, 1, 1], [], []>} : vector<8x16xf32>, vector<16x512xf32>, vector<8x512xf32> -> vector<8x512xf32>
    %c0_3 = arith.constant 0 : index
    %c0_4 = arith.constant 0 : index
    %3 = vector.load %arg2[%c0_3, %c0_4] : memref<8x128xf32, #tpu.memory_space<vmem>>, vector<8x128xf32>
    %c0_5 = arith.constant 0 : index
    %c0_6 = arith.constant 0 : index
    %4 = vector.load %arg5[%c0_5, %c0_6] : memref<128x512xf32, #tpu.memory_space<vmem>>, vector<128x512xf32>
    %cst_7 = arith.constant dense<0.000000e+00> : vector<8x512xf32>
    %5 = tpu.matmul %3, %4, %cst_7 {dimension_numbers = #tpu.dot_dimension_numbers<[1], [0], [0], [1], [0, 0, 1, 1], [], []>} : vector<8x128xf32>, vector<128x512xf32>, vector<8x512xf32> -> vector<8x512xf32>
    %6 = arith.addf %2, %5 : vector<8x512xf32>
    %c0_8 = arith.constant 0 : index
    %c0_9 = arith.constant 0 : index
    %7 = vector.load %arg6[%c0_8, %c0_9] : memref<1x512xf32, #tpu.memory_space<vmem>>, vector<1x512xf32>
    %8 = vector.broadcast %7 : vector<1x512xf32> to vector<8x512xf32>
    %9 = arith.addf %6, %8 : vector<8x512xf32>
    %10 = vector.extract_strided_slice %9 {offsets = [0, 0], sizes = [8, 128], strides = [1, 1]} : vector<8x512xf32> to vector<8x128xf32>
    %cst_10 = arith.constant 5.000000e-01 : f32
    %11 = vector.broadcast %cst_10 : f32 to vector<8x128xf32>
    %12 = arith.mulf %11, %10 : vector<8x128xf32>
    %13 = math.tanh %12 : vector<8x128xf32>
    %cst_11 = arith.constant 5.000000e-01 : f32
    %14 = vector.broadcast %cst_11 : f32 to vector<8x128xf32>
    %15 = arith.mulf %14, %13 : vector<8x128xf32>
    %cst_12 = arith.constant 5.000000e-01 : f32
    %16 = vector.broadcast %cst_12 : f32 to vector<8x128xf32>
    %17 = arith.addf %15, %16 : vector<8x128xf32>
    %18 = vector.extract_strided_slice %9 {offsets = [0, 128], sizes = [8, 128], strides = [1, 1]} : vector<8x512xf32> to vector<8x128xf32>
    %cst_13 = arith.constant 5.000000e-01 : f32
    %19 = vector.broadcast %cst_13 : f32 to vector<8x128xf32>
    %20 = arith.mulf %19, %18 : vector<8x128xf32>
    %21 = math.tanh %20 : vector<8x128xf32>
    %cst_14 = arith.constant 5.000000e-01 : f32
    %22 = vector.broadcast %cst_14 : f32 to vector<8x128xf32>
    %23 = arith.mulf %22, %21 : vector<8x128xf32>
    %cst_15 = arith.constant 5.000000e-01 : f32
    %24 = vector.broadcast %cst_15 : f32 to vector<8x128xf32>
    %25 = arith.addf %23, %24 : vector<8x128xf32>
    %26 = vector.extract_strided_slice %9 {offsets = [0, 256], sizes = [8, 128], strides = [1, 1]} : vector<8x512xf32> to vector<8x128xf32>
    %27 = math.tanh %26 : vector<8x128xf32>
    %28 = vector.extract_strided_slice %9 {offsets = [0, 384], sizes = [8, 128], strides = [1, 1]} : vector<8x512xf32> to vector<8x128xf32>
    %cst_16 = arith.constant 5.000000e-01 : f32
    %29 = vector.broadcast %cst_16 : f32 to vector<8x128xf32>
    %30 = arith.mulf %29, %28 : vector<8x128xf32>
    %31 = math.tanh %30 : vector<8x128xf32>
    %cst_17 = arith.constant 5.000000e-01 : f32
    %32 = vector.broadcast %cst_17 : f32 to vector<8x128xf32>
    %33 = arith.mulf %32, %31 : vector<8x128xf32>
    %cst_18 = arith.constant 5.000000e-01 : f32
    %34 = vector.broadcast %cst_18 : f32 to vector<8x128xf32>
    %35 = arith.addf %33, %34 : vector<8x128xf32>
    %c0_19 = arith.constant 0 : index
    %c0_20 = arith.constant 0 : index
    %36 = vector.load %arg3[%c0_19, %c0_20] : memref<8x128xf32, #tpu.memory_space<vmem>>, vector<8x128xf32>
    %37 = arith.mulf %25, %36 : vector<8x128xf32>
    %38 = arith.mulf %17, %27 : vector<8x128xf32>
    %39 = arith.addf %37, %38 : vector<8x128xf32>
    %40 = math.tanh %39 : vector<8x128xf32>
    %41 = arith.mulf %35, %40 : vector<8x128xf32>
    %c0_21 = arith.constant 0 : index
    %c0_22 = arith.constant 0 : index
    %42 = vector.load %arg8[%c0_21, %c0_22] : memref<8x128xf32, #tpu.memory_space<vmem>>, vector<8x128xf32>
    tpu.vector_store %arg8[%c0_21, %c0_22], %39 {strides = array<i32>} : memref<8x128xf32, #tpu.memory_space<vmem>>, vector<8x128xf32>,
    %c0_23 = arith.constant 0 : index
    %c0_24 = arith.constant 0 : index
    %43 = vector.load %arg7[%c0_23, %c0_24] : memref<8x128xf32, #tpu.memory_space<vmem>>, vector<8x128xf32>
    tpu.vector_store %arg7[%c0_23, %c0_24], %41 {strides = array<i32>} : memref<8x128xf32, #tpu.memory_space<vmem>>, vector<8x128xf32>,
    return
  }
  func.func @transform_0(%arg0: i32) -> (i32, i32) {
    %c0_i32 = arith.constant 0 : i32
    %c0_i32_0 = arith.constant 0 : i32
    return %arg0, %c0_i32 : i32, i32
  }
  func.func @transform_1(%arg0: i32) -> (i32, i32) {
    %c0_i32 = arith.constant 0 : i32
    %c0_i32_0 = arith.constant 0 : i32
    return %arg0, %c0_i32 : i32, i32
  }
  func.func @transform_2(%arg0: i32) -> (i32, i32) {
    %c0_i32 = arith.constant 0 : i32
    %c0_i32_0 = arith.constant 0 : i32
    return %arg0, %c0_i32 : i32, i32
  }
  func.func @transform_3(%arg0: i32) -> (i32, i32) {
    %c0_i32 = arith.constant 0 : i32
    %c0_i32_0 = arith.constant 0 : i32
    %c0_i32_1 = arith.constant 0 : i32
    return %c0_i32, %c0_i32_0 : i32, i32
  }
  func.func @transform_4(%arg0: i32) -> (i32, i32) {
    %c0_i32 = arith.constant 0 : i32
    %c0_i32_0 = arith.constant 0 : i32
    %c0_i32_1 = arith.constant 0 : i32
    return %c0_i32, %c0_i32_0 : i32, i32
  }
  func.func @transform_5(%arg0: i32) -> (i32, i32) {
    %c0_i32 = arith.constant 0 : i32
    %c0_i32_0 = arith.constant 0 : i32
    %c0_i32_1 = arith.constant 0 : i32
    return %c0_i32, %c0_i32_0 : i32, i32
  }
  func.func @transform_6(%arg0: i32) -> (i32, i32) {
    %c0_i32 = arith.constant 0 : i32
    %c0_i32_0 = arith.constant 0 : i32
    return %arg0, %c0_i32 : i32, i32
  }
  func.func @transform_7(%arg0: i32) -> (i32, i32) {
    %c0_i32 = arith.constant 0 : i32
    %c0_i32_0 = arith.constant 0 : i32
    return %arg0, %c0_i32 : i32, i32
  }
}

module attributes {stable_mosaic.version = 11 : i64} {
  func.func @lstm_cell_kernel(%arg0: i32, %arg1: memref<8x16xf32, #tpu.memory_space<vmem>>, %arg2: memref<8x128xf32, #tpu.memory_space<vmem>>, %arg3: memref<8x128xf32, #tpu.memory_space<vmem>>, %arg4: memref<16x512xf32, #tpu.memory_space<vmem>>, %arg5: memref<128x512xf32, #tpu.memory_space<vmem>>, %arg6: memref<1x512xf32, #tpu.memory_space<vmem>>, %arg7: memref<8x128xf32, #tpu.memory_space<vmem>>, %arg8: memref<8x128xf32, #tpu.memory_space<vmem>>) attributes {dimension_semantics = [#tpu.dimension_semantics<parallel>], iteration_bounds = array<i64: 1>, scalar_prefetch = 0 : i64, scratch_operands = 0 : i64, tpu.core_type = #tpu.core_type<tc>, window_params = [{transform_indices = @transform_0, window_bounds = array<i64: 8, 16>}, {transform_indices = @transform_1, window_bounds = array<i64: 8, 128>}, {transform_indices = @transform_2, window_bounds = array<i64: 8, 128>}, {pipeline_mode = #tpu.pipeline_mode<synchronous>, transform_indices = @transform_3, window_bounds = array<i64: 16, 512>}, {pipeline_mode = #tpu.pipeline_mode<synchronous>, transform_indices = @transform_4, window_bounds = array<i64: 128, 512>}, {pipeline_mode = #tpu.pipeline_mode<synchronous>, transform_indices = @transform_5, window_bounds = array<i64: 1, 512>}, {transform_indices = @transform_6, window_bounds = array<i64: 8, 128>}, {transform_indices = @transform_7, window_bounds = array<i64: 8, 128>}]} {
    %c0 = arith.constant 0 : index
    %c0_0 = arith.constant 0 : index
    %0 = vector.load %arg1[%c0, %c0_0] : memref<8x16xf32, #tpu.memory_space<vmem>>, vector<8x16xf32>
    %c0_1 = arith.constant 0 : index
    %c0_2 = arith.constant 0 : index
    %1 = vector.load %arg4[%c0_1, %c0_2] : memref<16x512xf32, #tpu.memory_space<vmem>>, vector<16x512xf32>
    %cst = arith.constant dense<0.000000e+00> : vector<8x512xf32>
    %2 = tpu.matmul %0, %1, %cst {dimension_numbers = #tpu.dot_dimension_numbers<[1], [0], [0], [1], [0, 0, 1, 1], [], []>} : vector<8x16xf32>, vector<16x512xf32>, vector<8x512xf32> -> vector<8x512xf32>
    %c0_3 = arith.constant 0 : index
    %c0_4 = arith.constant 0 : index
    %3 = vector.load %arg2[%c0_3, %c0_4] : memref<8x128xf32, #tpu.memory_space<vmem>>, vector<8x128xf32>
    %c0_5 = arith.constant 0 : index
    %c0_6 = arith.constant 0 : index
    %4 = vector.load %arg5[%c0_5, %c0_6] : memref<128x512xf32, #tpu.memory_space<vmem>>, vector<128x512xf32>
    %cst_7 = arith.constant dense<0.000000e+00> : vector<8x512xf32>
    %5 = tpu.matmul %3, %4, %cst_7 {dimension_numbers = #tpu.dot_dimension_numbers<[1], [0], [0], [1], [0, 0, 1, 1], [], []>} : vector<8x128xf32>, vector<128x512xf32>, vector<8x512xf32> -> vector<8x512xf32>
    %6 = arith.addf %2, %5 : vector<8x512xf32>
    %c0_8 = arith.constant 0 : index
    %c0_9 = arith.constant 0 : index
    %7 = vector.load %arg6[%c0_8, %c0_9] : memref<1x512xf32, #tpu.memory_space<vmem>>, vector<1x512xf32>
    %8 = vector.broadcast %7 : vector<1x512xf32> to vector<8x512xf32>
    %9 = arith.addf %6, %8 : vector<8x512xf32>
    %10 = vector.extract_strided_slice %9 {offsets = [0, 0], sizes = [8, 128], strides = [1, 1]} : vector<8x512xf32> to vector<8x128xf32>
    %cst_10 = arith.constant 5.000000e-01 : f32
    %11 = vector.broadcast %cst_10 : f32 to vector<8x128xf32>
    %12 = arith.mulf %11, %10 : vector<8x128xf32>
    %13 = math.tanh %12 : vector<8x128xf32>
    %cst_11 = arith.constant 5.000000e-01 : f32
    %14 = vector.broadcast %cst_11 : f32 to vector<8x128xf32>
    %15 = arith.mulf %14, %13 : vector<8x128xf32>
    %cst_12 = arith.constant 5.000000e-01 : f32
    %16 = vector.broadcast %cst_12 : f32 to vector<8x128xf32>
    %17 = arith.addf %15, %16 : vector<8x128xf32>
    %18 = vector.extract_strided_slice %9 {offsets = [0, 128], sizes = [8, 128], strides = [1, 1]} : vector<8x512xf32> to vector<8x128xf32>
    %cst_13 = arith.constant 5.000000e-01 : f32
    %19 = vector.broadcast %cst_13 : f32 to vector<8x128xf32>
    %20 = arith.mulf %19, %18 : vector<8x128xf32>
    %21 = math.tanh %20 : vector<8x128xf32>
    %cst_14 = arith.constant 5.000000e-01 : f32
    %22 = vector.broadcast %cst_14 : f32 to vector<8x128xf32>
    %23 = arith.mulf %22, %21 : vector<8x128xf32>
    %cst_15 = arith.constant 5.000000e-01 : f32
    %24 = vector.broadcast %cst_15 : f32 to vector<8x128xf32>
    %25 = arith.addf %23, %24 : vector<8x128xf32>
    %26 = vector.extract_strided_slice %9 {offsets = [0, 256], sizes = [8, 128], strides = [1, 1]} : vector<8x512xf32> to vector<8x128xf32>
    %27 = math.tanh %26 : vector<8x128xf32>
    %28 = vector.extract_strided_slice %9 {offsets = [0, 384], sizes = [8, 128], strides = [1, 1]} : vector<8x512xf32> to vector<8x128xf32>
    %cst_16 = arith.constant 5.000000e-01 : f32
    %29 = vector.broadcast %cst_16 : f32 to vector<8x128xf32>
    %30 = arith.mulf %29, %28 : vector<8x128xf32>
    %31 = math.tanh %30 : vector<8x128xf32>
    %cst_17 = arith.constant 5.000000e-01 : f32
    %32 = vector.broadcast %cst_17 : f32 to vector<8x128xf32>
    %33 = arith.mulf %32, %31 : vector<8x128xf32>
    %cst_18 = arith.constant 5.000000e-01 : f32
    %34 = vector.broadcast %cst_18 : f32 to vector<8x128xf32>
    %35 = arith.addf %33, %34 : vector<8x128xf32>
    %c0_19 = arith.constant 0 : index
    %c0_20 = arith.constant 0 : index
    %36 = vector.load %arg3[%c0_19, %c0_20] : memref<8x128xf32, #tpu.memory_space<vmem>>, vector<8x128xf32>
    %37 = arith.mulf %25, %36 : vector<8x128xf32>
    %38 = arith.mulf %17, %27 : vector<8x128xf32>
    %39 = arith.addf %37, %38 : vector<8x128xf32>
    %40 = math.tanh %39 : vector<8x128xf32>
    %41 = arith.mulf %35, %40 : vector<8x128xf32>
    %c0_21 = arith.constant 0 : index
    %c0_22 = arith.constant 0 : index
    %42 = vector.load %arg8[%c0_21, %c0_22] : memref<8x128xf32, #tpu.memory_space<vmem>>, vector<8x128xf32>
    tpu.vector_store %arg8[%c0_21, %c0_22], %39 {strides = array<i32>} : memref<8x128xf32, #tpu.memory_space<vmem>>, vector<8x128xf32>,
    %c0_23 = arith.constant 0 : index
    %c0_24 = arith.constant 0 : index
    %43 = vector.load %arg7[%c0_23, %c0_24] : memref<8x128xf32, #tpu.memory_space<vmem>>, vector<8x128xf32>
    tpu.vector_store %arg7[%c0_23, %c0_24], %41 {strides = array<i32>} : memref<8x128xf32, #tpu.memory_space<vmem>>, vector<8x128xf32>,
    return
  }
  func.func @transform_0(%arg0: i32) -> (i32, i32) {
    %c0_i32 = arith.constant 0 : i32
    %c0_i32_0 = arith.constant 0 : i32
    return %arg0, %c0_i32 : i32, i32
  }
  func.func @transform_1(%arg0: i32) -> (i32, i32) {
    %c0_i32 = arith.constant 0 : i32
    %c0_i32_0 = arith.constant 0 : i32
    return %arg0, %c0_i32 : i32, i32
  }
  func.func @transform_2(%arg0: i32) -> (i32, i32) {
    %c0_i32 = arith.constant 0 : i32
    %c0_i32_0 = arith.constant 0 : i32
    return %arg0, %c0_i32 : i32, i32
  }
  func.func @transform_3(%arg0: i32) -> (i32, i32) {
    %c0_i32 = arith.constant 0 : i32
    %c0_i32_0 = arith.constant 0 : i32
    %c0_i32_1 = arith.constant 0 : i32
    return %c0_i32, %c0_i32_0 : i32, i32
  }
  func.func @transform_4(%arg0: i32) -> (i32, i32) {
    %c0_i32 = arith.constant 0 : i32
    %c0_i32_0 = arith.constant 0 : i32
    %c0_i32_1 = arith.constant 0 : i32
    return %c0_i32, %c0_i32_0 : i32, i32
  }
  func.func @transform_5(%arg0: i32) -> (i32, i32) {
    %c0_i32 = arith.constant 0 : i32
    %c0_i32_0 = arith.constant 0 : i32
    %c0_i32_1 = arith.constant 0 : i32
    return %c0_i32, %c0_i32_0 : i32, i32
  }
  func.func @transform_6(%arg0: i32) -> (i32, i32) {
    %c0_i32 = arith.constant 0 : i32
    %c0_i32_0 = arith.constant 0 : i32
    return %arg0, %c0_i32 : i32, i32
  }
  func.func @transform_7(%arg0: i32) -> (i32, i32) {
    %c0_i32 = arith.constant 0 : i32
    %c0_i32_0 = arith.constant 0 : i32
    return %arg0, %c0_i32 : i32, i32
  }
}

</mosaic_0001>

<bundles_post_ra>
// kernel: tpu_custom_call.1
= control target key start
LH: loop header
LB: loop body
LE: loop exit
PB: predicated region body
PF: predicated region fallthrough
CT: control target
= control target key end

     0   :  { %13 = vsyncpa [#allocation3], 0  ;;  %s681_s0 = inlined_call_operand.hbm [shape: f32[8,16], index: 0, kind: input, shape index: {}]   ;;  %s682_s1 = inlined_call_operand.hbm [shape: f32[8,128], index: 1, kind: input, shape index: {}]   ;;  %s683_s2 = inlined_call_operand.hbm [shape: f32[8,128], index: 2, kind: input, shape index: {}]   ;;  %s684_s3 = inlined_call_operand.hbm [shape: f32[16,512], index: 3, kind: input, shape index: {}]   ;;  %s685_s4 = inlined_call_operand.hbm [shape: f32[128,512], index: 4, kind: input, shape index: {}]   ;;  %s686_s5 = inlined_call_operand.vmem [shape: f32[1,512], index: 5, kind: input, shape index: {}]   ;;  %s687_s6 = inlined_call_operand.hbm [shape: f32[8,128], index: 6, kind: output, shape index: {0}]   ;;  %s688_s7 = inlined_call_operand.hbm [shape: f32[8,128], index: 7, kind: output, shape index: {1}]  }
   0x1   :  { %14 = vsyncpa [#allocation6], 0 }
   0x2   :  { %15 = vsyncpa [#allocation9], 0 }
   0x3   :  { %16 = vsyncpa [#allocation4], 0  ;;  %s34_s26 = sshll.u32 %s682_s1, 4  ;;  %s35_s26 = int_to_ptr.hbm [resolvable:$true] %s34_s26 }
   0x4   :  { %17 = vsyncpa [#allocation13], 0  ;;  %s608_s27 = smov [#allocation5]   ;;  %s55_s8 = sshll.u32 %s684_s3, 4  ;;  %s56_s8 = int_to_ptr.hbm [resolvable:$true] %s55_s8 }
   0x5   :  { %s36_s28 = sshll.u32 %s608_s27, 4  ;;  %s609_s9 = smov [#allocation8]   ;;  %s37_s28 = int_to_ptr.vmem [resolvable:$true] %s36_s28 }
   0x6   :  { %39 = dma.hbm_to_vmem [thread:$0]  %s35_s26, 128, %s37_s28, [#allocation6]  }
   0x7   :  { %s57_s10 = sshll.u32 %s609_s9, 4  ;;  %s610_s11 = smov 512   ;;  %s58_s10 = int_to_ptr.vmem [resolvable:$true] %s57_s10 }
   0x8   :  { %s611_s12 = smov 32   ;;  %s23_s1 = sshll.u32 %s681_s0, 4  ;;  %s24_s1 = int_to_ptr.hbm [resolvable:$true] %s23_s1 }
   0x9   :  { %63 = dma.hbm_to_vmem [thread:$0]  %s56_s8, 1024, %s58_s10, [#allocation9], %s610_s11, %s610_s11, %s611_s12  }
   0xa   :  { %s612_s15 = smov [#allocation2]   ;;  %s45_s3 = sshll.u32 %s683_s2, 4  ;;  %s46_s3 = int_to_ptr.hbm [resolvable:$true] %s45_s3 }
   0xb   :  { %s25_s16 = sshll.u32 %s612_s15, 4  ;;  %s613_s19 = smov [#allocation7]   ;;  %s26_s16 = int_to_ptr.vmem [resolvable:$true] %s25_s16 }
   0xc   :  { %28 = dma.hbm_to_vmem [thread:$0]  %s24_s1, 128, %s26_s16, [#allocation3]  }
   0xd   :  { %s47_s20 = sshll.u32 %s613_s19, 4  ;;  %s68_s23 = sshll.u32 %s685_s4, 4  ;;  %s48_s20 = int_to_ptr.vmem [resolvable:$true] %s47_s20  ;;  %s69_s23 = int_to_ptr.hbm [resolvable:$true] %s68_s23 }
   0xe   :  { %50 = dma.hbm_to_vmem [thread:$0]  %s46_s3, 128, %s48_s20, [#allocation6]  }
   0xf   :  { %s614_s0 = smov [#allocation10]  }
  0x10   :  { %s70_s24 = sshll.u32 %s614_s0, 4  ;;  %s71_s24 = int_to_ptr.vmem [resolvable:$true] %s70_s24 }
  0x11   :  { %76 = dma.hbm_to_vmem [thread:$0]  %s69_s23, 8192, %s71_s24, [#allocation9], %s610_s11, %s610_s11, %s611_s12  }
  0x12   :  { %598 = dma.done.wait [#allocation3], 128  }
  0x13   :  { %599 = vsyncadd [#allocation3], 4294967168 }
  0x14   :  { %600 = dma.done.wait [#allocation6], 256  }
  0x15   :  { %601 = vsyncadd [#allocation6], 4294967040 }
  0x16   :  { %602 = dma.done.wait [#allocation9], 9216  }
  0x17   :  { %603 = vsyncadd [#allocation9], 4294958080  ;;  %v169_v0 = vld [vmem:[#allocation10 + $0x1e0] sm:$0xff]  ;;  %v170_v1 = vld [vmem:[#allocation10 + $0x1e8] sm:$0xff]  ;;  %vm253_vm0 = vcmask 130048   ;;  %s390_s28 = sshll.u32 %s688_s7, 4  ;;  %s391_s28 = int_to_ptr.hbm [resolvable:$true] %s390_s28 }
  0x18   :  { %v171_v2 = vld [vmem:[#allocation10 + $0x1f0] sm:$0xff]  ;;  %173 = vmatpush.msra.mxu0 %v169_v0  ;;  %193 = vmatpush.msra.mxu1 %v170_v1  ;;  %v172_v3 = vld [vmem:[#allocation10 + $0x1f8] sm:$0xff]  ;;  %v165_v4 = vld [vmem:[#allocation10 + $0x1c0] sm:$0xff]  ;;  %s616_s29 = smov [#allocation11]   ;;  %s379_s10 = sshll.u32 %s687_s6, 4  ;;  %s380_s10 = int_to_ptr.hbm [resolvable:$true] %s379_s10 }
  0x19   :  { %v166_v5 = vld [vmem:[#allocation10 + $0x1c8] sm:$0xff]  ;;  %213 = vmatpush.msra.mxu2 %v171_v2  ;;  %233 = vmatpush.msra.mxu3 %v172_v3  ;;  %v167_v6 = vld [vmem:[#allocation10 + $0x1d0] sm:$0xff]  ;;  %v168_v7 = vld [vmem:[#allocation10 + $0x1d8] sm:$0xff]  ;;  %s377_s30 = sshll.u32 %s616_s29, 4  ;;  %s378_s30 = int_to_ptr.vmem [resolvable:$true] %s377_s30 }
  0x1a   :  { %v161_v8 = vld [vmem:[#allocation10 + $0x1a0] sm:$0xff]  ;;  %174 = vmatpush.msra.mxu0 %v165_v4  ;;  %194 = vmatpush.msra.mxu1 %v166_v5  ;;  %v162_v9 = vld [vmem:[#allocation10 + $0x1a8] sm:$0xff]  ;;  %v163_v10 = vld [vmem:[#allocation10 + $0x1b0] sm:$0xff] }
  0x1b   :  { %v164_v11 = vld [vmem:[#allocation10 + $0x1b8] sm:$0xff]  ;;  %214 = vmatpush.msra.mxu2 %v167_v6  ;;  %234 = vmatpush.msra.mxu3 %v168_v7  ;;  %v157_v12 = vld [vmem:[#allocation10 + $0x180] sm:$0xff]  ;;  %v158_v13 = vld [vmem:[#allocation10 + $0x188] sm:$0xff] }
  0x1c   :  { %175 = vmatpush.msra.mxu0 %v161_v8  ;;  %195 = vmatpush.msra.mxu1 %v162_v9  ;;  %v159_v14 = vld [vmem:[#allocation10 + $0x190] sm:$0xff]  ;;  %v160_v15 = vld [vmem:[#allocation10 + $0x198] sm:$0xff]  ;;  %v153_v16 = vld [vmem:[#allocation10 + $0x160] sm:$0xff] }
  0x1d   :  { %215 = vmatpush.msra.mxu2 %v163_v10  ;;  %235 = vmatpush.msra.mxu3 %v164_v11  ;;  %v154_v17 = vld [vmem:[#allocation10 + $0x168] sm:$0xff]  ;;  %v155_v18 = vld [vmem:[#allocation10 + $0x170] sm:$0xff]  ;;  %v156_v19 = vld [vmem:[#allocation10 + $0x178] sm:$0xff] }
  0x1e   :  { %176 = vmatpush.msra.mxu0 %v157_v12  ;;  %196 = vmatpush.msra.mxu1 %v158_v13  ;;  %v149_v20 = vld [vmem:[#allocation10 + $0x140] sm:$0xff]  ;;  %v150_v21 = vld [vmem:[#allocation10 + $0x148] sm:$0xff]  ;;  %v151_v22 = vld [vmem:[#allocation10 + $0x150] sm:$0xff] }
  0x1f   :  { %216 = vmatpush.msra.mxu2 %v159_v14  ;;  %236 = vmatpush.msra.mxu3 %v160_v15  ;;  %v152_v23 = vld [vmem:[#allocation10 + $0x158] sm:$0xff]  ;;  %v145_v24 = vld [vmem:[#allocation10 + $0x120] sm:$0xff]  ;;  %v146_v25 = vld [vmem:[#allocation10 + $0x128] sm:$0xff] }
  0x20   :  { %177 = vmatpush.msra.mxu0 %v153_v16  ;;  %197 = vmatpush.msra.mxu1 %v154_v17  ;;  %v147_v26 = vld [vmem:[#allocation10 + $0x130] sm:$0xff]  ;;  %v148_v27 = vld [vmem:[#allocation10 + $0x138] sm:$0xff]  ;;  %v141_v28 = vld [vmem:[#allocation10 + $0x100] sm:$0xff] }
  0x21   :  { %217 = vmatpush.msra.mxu2 %v155_v18  ;;  %237 = vmatpush.msra.mxu3 %v156_v19  ;;  %v142_v29 = vld [vmem:[#allocation10 + $0x108] sm:$0xff]  ;;  %v143_v30 = vld [vmem:[#allocation10 + $0x110] sm:$0xff]  ;;  %v144_v31 = vld [vmem:[#allocation10 + $0x118] sm:$0xff] }
  0x22   :  { %178 = vmatpush.msra.mxu0 %v149_v20  ;;  %198 = vmatpush.msra.mxu1 %v150_v21  ;;  %v137_v32 = vld [vmem:[#allocation10 + $0xe0] sm:$0xff]  ;;  %v138_v33 = vld [vmem:[#allocation10 + $0xe8] sm:$0xff]  ;;  %v139_v34 = vld [vmem:[#allocation10 + $0xf0] sm:$0xff] }
  0x23   :  { %218 = vmatpush.msra.mxu2 %v151_v22  ;;  %238 = vmatpush.msra.mxu3 %v152_v23  ;;  %v140_v35 = vld [vmem:[#allocation10 + $0xf8] sm:$0xff]  ;;  %v133_v36 = vld [vmem:[#allocation10 + $0xc0] sm:$0xff]  ;;  %v134_v37 = vld [vmem:[#allocation10 + $0xc8] sm:$0xff] }
  0x24   :  { %179 = vmatpush.msra.mxu0 %v145_v24  ;;  %199 = vmatpush.msra.mxu1 %v146_v25  ;;  %v135_v38 = vld [vmem:[#allocation10 + $0xd0] sm:$0xff]  ;;  %v136_v39 = vld [vmem:[#allocation10 + $0xd8] sm:$0xff]  ;;  %v129_v40 = vld [vmem:[#allocation10 + $0xa0] sm:$0xff] }
  0x25   :  { %219 = vmatpush.msra.mxu2 %v147_v26  ;;  %239 = vmatpush.msra.mxu3 %v148_v27  ;;  %v130_v41 = vld [vmem:[#allocation10 + $0xa8] sm:$0xff]  ;;  %v131_v42 = vld [vmem:[#allocation10 + $0xb0] sm:$0xff]  ;;  %v132_v43 = vld [vmem:[#allocation10 + $0xb8] sm:$0xff] }
  0x26   :  { %180 = vmatpush.msra.mxu0 %v141_v28  ;;  %200 = vmatpush.msra.mxu1 %v142_v29  ;;  %v125_v44 = vld [vmem:[#allocation10 + $0x80] sm:$0xff]  ;;  %v126_v45 = vld [vmem:[#allocation10 + $0x88] sm:$0xff]  ;;  %v127_v46 = vld [vmem:[#allocation10 + $0x90] sm:$0xff] }
  0x27   :  { %220 = vmatpush.msra.mxu2 %v143_v30  ;;  %240 = vmatpush.msra.mxu3 %v144_v31  ;;  %v128_v47 = vld [vmem:[#allocation10 + $0x98] sm:$0xff]  ;;  %v121_v48 = vld [vmem:[#allocation10 + $0x60] sm:$0xff]  ;;  %v122_v49 = vld [vmem:[#allocation10 + $0x68] sm:$0xff] }
  0x28   :  { %181 = vmatpush.msra.mxu0 %v137_v32  ;;  %201 = vmatpush.msra.mxu1 %v138_v33  ;;  %v123_v50 = vld [vmem:[#allocation10 + $0x70] sm:$0xff]  ;;  %v124_v51 = vld [vmem:[#allocation10 + $0x78] sm:$0xff]  ;;  %v117_v52 = vld [vmem:[#allocation10 + $0x40] sm:$0xff] }
  0x29   :  { %221 = vmatpush.msra.mxu2 %v139_v34  ;;  %241 = vmatpush.msra.mxu3 %v140_v35  ;;  %v118_v53 = vld [vmem:[#allocation10 + $0x48] sm:$0xff]  ;;  %v119_v54 = vld [vmem:[#allocation10 + $0x50] sm:$0xff]  ;;  %v120_v55 = vld [vmem:[#allocation10 + $0x58] sm:$0xff] }
  0x2a   :  { %182 = vmatpush.msra.mxu0 %v133_v36  ;;  %202 = vmatpush.msra.mxu1 %v134_v37  ;;  %v113_v56 = vld [vmem:[#allocation10 + $0x20] sm:$0xff]  ;;  %v114_v57 = vld [vmem:[#allocation10 + $0x28] sm:$0xff]  ;;  %v115_v58 = vld [vmem:[#allocation10 + $0x30] sm:$0xff] }
  0x2b   :  { %222 = vmatpush.msra.mxu2 %v135_v38  ;;  %242 = vmatpush.msra.mxu3 %v136_v39  ;;  %v116_v59 = vld [vmem:[#allocation10 + $0x38] sm:$0xff]  ;;  %v109_v60 = vld [vmem:[#allocation10] sm:$0xff]  ;;  %v110_v61 = vld [vmem:[#allocation10 + $0x8] sm:$0xff] }
  0x2c   :  { %183 = vmatpush.msra.mxu0 %v129_v40  ;;  %203 = vmatpush.msra.mxu1 %v130_v41  ;;  %v111_v62 = vld [vmem:[#allocation10 + $0x10] sm:$0xff]  ;;  %v112_v63 = vld [vmem:[#allocation10 + $0x18] sm:$0xff]  ;;  %v104_v1 = vld [vmem:[#allocation8 + $0x20] sm:$0xff] }
  0x2d   :  { %223 = vmatpush.msra.mxu2 %v131_v42  ;;  %243 = vmatpush.msra.mxu3 %v132_v43  ;;  %v108_v0 = vld [vmem:[#allocation5] sm:$0xff]  ;;  %v105_v2 = vld [vmem:[#allocation8 + $0x28] sm:$0xff]  ;;  %v107_v4 = vld [vmem:[#allocation8 + $0x38] sm:$0xff] }
  0x2e   :  { %184 = vmatpush.msra.mxu0 %v125_v44  ;;  %204 = vmatpush.msra.mxu1 %v126_v45  ;;  %v106_v3 = vld [vmem:[#allocation8 + $0x30] sm:$0xff]  ;;  %v100_v5 = vld [vmem:[#allocation8] sm:$0xff]  ;;  %v101_v6 = vld [vmem:[#allocation8 + $0x8] sm:$0xff] }
  0x2f   :  { %224 = vmatpush.msra.mxu2 %v127_v46  ;;  %244 = vmatpush.msra.mxu3 %v128_v47  ;;  %v102_v7 = vld [vmem:[#allocation8 + $0x10] sm:$0xff]  ;;  %v103_v8 = vld [vmem:[#allocation8 + $0x18] sm:$0xff]  ;;  %v99_v9 = vld [vmem:[#allocation2] sm:$0xff] }
  0x30   :  { %185 = vmatpush.msra.mxu0 %v121_v48  ;;  %205 = vmatpush.msra.mxu1 %v122_v49  ;;  %v337_v12 = vld [vmem:[%s686_s5] sm:$0xf]  ;;  %v364_v39 = vld [vmem:[#allocation7] sm:$0xff]  ;;  %s615_s5 = smov [#allocation12]  }
  0x31   :  { %225 = vmatpush.msra.mxu2 %v123_v50  ;;  %245 = vmatpush.msra.mxu3 %v124_v51  ;;  %v339_v15 = vperm.slane %v337_v12, 0  ;;  %v340_v16 = vperm.slane %v337_v12, 1  ;;  %v341_v25 = vperm.slane %v337_v12, 2  ;;  %v342_v26 = vperm.slane %v337_v12, 3  ;;  %s388_s25 = sshll.u32 %s615_s5, 4  ;;  %s389_s25 = int_to_ptr.vmem [resolvable:$true] %s388_s25 }
  0x32   :  { %186 = vmatpush.msra.mxu0 %v117_v52  ;;  %206 = vmatpush.msra.mxu1 %v118_v53 }
  0x33   :  { %226 = vmatpush.msra.mxu2 %v119_v54  ;;  %246 = vmatpush.msra.mxu3 %v120_v55 }
  0x34   :  { %187 = vmatpush.msra.mxu0 %v113_v56  ;;  %207 = vmatpush.msra.mxu1 %v114_v57 }
  0x35   :  { %227 = vmatpush.msra.mxu2 %v115_v58  ;;  %247 = vmatpush.msra.mxu3 %v116_v59 }
  0x36   :  { %188 = vmatpush.msra.mxu0 %v109_v60  ;;  %208 = vmatpush.msra.mxu1 %v110_v61 }
  0x37   :  { %228 = vmatpush.msra.mxu2 %v111_v62  ;;  %248 = vmatpush.msra.mxu3 %v112_v63 }
  0x38   :  { %189 = vmatmul.f32.vlgmr.msra.gmra.mxu0 %v108_v0  ;;  %209 = vmatmul.f32.vlgmr.msra.gmra.mxu1 %v108_v0 }
  0x39   :  { %229 = vmatmul.f32.vlgmr.msra.gmra.mxu2 %v108_v0  ;;  %249 = vmatmul.f32.vlgmr.msra.gmra.mxu3 %v108_v0 }
  0x3a   :  { %271 = vmatpush.msrb.mxu0 %v104_v1  ;;  %291 = vmatpush.msrb.mxu1 %v105_v2 }
  0x3b   :  { %311 = vmatpush.msrb.mxu2 %v106_v3  ;;  %331 = vmatpush.msrb.mxu3 %v107_v4 }
  0x3c   :  { %272 = vmatpush.msrb.mxu0 %v100_v5  ;;  %292 = vmatpush.msrb.mxu1 %v101_v6 }
  0x3d   :  { %312 = vmatpush.msrb.mxu2 %v102_v7  ;;  %332 = vmatpush.msrb.mxu3 %v103_v8 }
  0x40   :  { %407 = vmatmul.msk.f32.vlgmr.msrb.gmra.mxu0 %vm253_vm0, %v99_v9  ;;  %408 = vmatmul.msk.f32.vlgmr.msrb.gmra.mxu1 %vm253_vm0, %v99_v9 }
  0x41   :  { %409 = vmatmul.msk.f32.vlgmr.msrb.gmra.mxu2 %vm253_vm0, %v99_v9  ;;  %410 = vmatmul.msk.f32.vlgmr.msrb.gmra.mxu3 %vm253_vm0, %v99_v9 }
  0xb5   :  { %v190_v10 = vpop.f32.mrf.mxu0  ;;  %v210_v11 = vpop.f32.mrf.mxu1 }
  0xbc   :  { %v230_v13 = vpop.f32.mrf.mxu2  ;;  %v250_v14 = vpop.f32.mrf.mxu3 }
  0xbd   :  { %v274_v17 = vpop.f32.mrf.mxu0  ;;  %v294_v18 = vpop.f32.mrf.mxu1 }
  0xbe   :  { %v275_v19 = vadd.f32 %v274_v17, %v190_v10  ;;  %v295_v20 = vadd.f32 %v294_v18, %v210_v11 }
  0xc0   :  { %v347_v21 = vadd.f32 %v339_v15, %v275_v19  ;;  %v348_v22 = vadd.f32 %v340_v16, %v295_v20 }
  0xc2   :  { %v351_v23 = vmul.f32 0.5, %v347_v21  ;;  %v355_v24 = vmul.f32 0.5, %v348_v22 }
  0xc4   :  { %420 = vtanh.f32 %v351_v23  ;;  %v314_v27 = vpop.f32.mrf.mxu2  ;;  %v334_v28 = vpop.f32.mrf.mxu3 }
  0xc5   :  { %422 = vtanh.f32 %v355_v24  ;;  %v315_v29 = vadd.f32 %v314_v27, %v230_v13  ;;  %v335_v30 = vadd.f32 %v334_v28, %v250_v14 }
  0xc7   :  { %v349_v31 = vadd.f32 %v341_v25, %v315_v29  ;;  %v350_v32 = vadd.f32 %v342_v26, %v335_v30 }
  0xc9   :  { %424 = vtanh.f32 %v349_v31  ;;  %v360_v33 = vmul.f32 0.5, %v350_v32 }
  0xca   :  { %v421_v34 = vpop.eup %420 }
  0xcb   :  { %v423_v35 = vpop.eup %422  ;;  %v353_v36 = vmul.f32 0.5, %v421_v34  ;;  %426 = vtanh.f32 %v360_v33 }
  0xcc   :  { %v357_v37 = vmul.f32 0.5, %v423_v35 }
  0xcd   :  { %v354_v38 = vadd.f32 0.5, %v353_v36 }
  0xce   :  { %v358_v40 = vadd.f32 0.5, %v357_v37 }
  0xcf   :  { %v425_v41 = vpop.eup %424 }
  0xd0   :  { %v365_v42 = vmul.f32 %v364_v39, %v358_v40  ;;  %v366_v43 = vmul.f32 %v425_v41, %v354_v38 }
  0xd1   :  { %v427_v44 = vpop.eup %426 }
  0xd2   :  { %v367_v45 = vadd.f32 %v366_v43, %v365_v42  ;;  %v362_v46 = vmul.f32 0.5, %v427_v44 }
  0xd4   :  { %370 = vst [vmem:[#allocation12] sm:$0xff] %v367_v45  ;;  %428 = vtanh.f32 %v367_v45  ;;  %v363_v47 = vadd.f32 0.5, %v362_v46 }
  0xd5   :  { %393 = dma.vmem_to_hbm [thread:$0]  %s389_s25, 128, %s391_s28, [#allocation13]  }
  0xda   :  { %v429_v48 = vpop.eup %428 }
  0xdb   :  { %v369_v49 = vmul.f32 %v429_v48, %v363_v47 }
  0xdd   :  { %371 = vst [vmem:[#allocation11] sm:$0xff] %v369_v49 }
  0xde   :  { %382 = dma.vmem_to_hbm [thread:$0]  %s378_s30, 128, %s380_s10, [#allocation4]  }
  0xdf   :  { %604 = dma.done.wait [#allocation4], 128  }
  0xe0   :  { %605 = vsyncadd [#allocation4], 4294967168 }
  0xe1   :  { %606 = dma.done.wait [#allocation13], 128  }
  0xe2   :  { %607 = vsyncadd [#allocation13], 4294967168 }
  0xe3   :  { %402 = vsyncpa [#allocation3], 1 }
  0xe4   :  { %403 = vsyncpa [#allocation6], 1 }
  0xe5   :  { %404 = vsyncpa [#allocation9], 1 }
  0xe6   :  { %405 = vsyncpa [#allocation4], 1 }
  0xe7   :  { %406 = vsyncpa [#allocation13], 1 }

// kernel: tpu_custom_call.1
= control target key start
LH: loop header
LB: loop body
LE: loop exit
PB: predicated region body
PF: predicated region fallthrough
CT: control target
= control target key end

     0   :  { %13 = vsyncpa [#allocation3], 0  ;;  %s681_s0 = inlined_call_operand.hbm [shape: f32[8,16], index: 0, kind: input, shape index: {}]   ;;  %s682_s1 = inlined_call_operand.hbm [shape: f32[8,128], index: 1, kind: input, shape index: {}]   ;;  %s683_s2 = inlined_call_operand.hbm [shape: f32[8,128], index: 2, kind: input, shape index: {}]   ;;  %s684_s3 = inlined_call_operand.hbm [shape: f32[16,512], index: 3, kind: input, shape index: {}]   ;;  %s685_s4 = inlined_call_operand.hbm [shape: f32[128,512], index: 4, kind: input, shape index: {}]   ;;  %s686_s5 = inlined_call_operand.vmem [shape: f32[1,512], index: 5, kind: input, shape index: {}]   ;;  %s687_s6 = inlined_call_operand.hbm [shape: f32[8,128], index: 6, kind: output, shape index: {0}]   ;;  %s688_s7 = inlined_call_operand.hbm [shape: f32[8,128], index: 7, kind: output, shape index: {1}]  }
   0x1   :  { %14 = vsyncpa [#allocation6], 0 }
   0x2   :  { %15 = vsyncpa [#allocation9], 0 }
   0x3   :  { %16 = vsyncpa [#allocation4], 0  ;;  %s34_s26 = sshll.u32 %s682_s1, 4  ;;  %s35_s26 = int_to_ptr.hbm [resolvable:$true] %s34_s26 }
   0x4   :  { %17 = vsyncpa [#allocation13], 0  ;;  %s608_s27 = smov [#allocation5]   ;;  %s55_s8 = sshll.u32 %s684_s3, 4  ;;  %s56_s8 = int_to_ptr.hbm [resolvable:$true] %s55_s8 }
   0x5   :  { %s36_s28 = sshll.u32 %s608_s27, 4  ;;  %s609_s9 = smov [#allocation8]   ;;  %s37_s28 = int_to_ptr.vmem [resolvable:$true] %s36_s28 }
   0x6   :  { %39 = dma.hbm_to_vmem [thread:$0]  %s35_s26, 128, %s37_s28, [#allocation6]  }
   0x7   :  { %s57_s10 = sshll.u32 %s609_s9, 4  ;;  %s610_s11 = smov 512   ;;  %s58_s10 = int_to_ptr.vmem [resolvable:$true] %s57_s10 }
   0x8   :  { %s611_s12 = smov 32   ;;  %s23_s1 = sshll.u32 %s681_s0, 4  ;;  %s24_s1 = int_to_ptr.hbm [resolvable:$true] %s23_s1 }
   0x9   :  { %63 = dma.hbm_to_vmem [thread:$0]  %s56_s8, 1024, %s58_s10, [#allocation9], %s610_s11, %s610_s11, %s611_s12  }
   0xa   :  { %s612_s15 = smov [#allocation2]   ;;  %s45_s3 = sshll.u32 %s683_s2, 4  ;;  %s46_s3 = int_to_ptr.hbm [resolvable:$true] %s45_s3 }
   0xb   :  { %s25_s16 = sshll.u32 %s612_s15, 4  ;;  %s613_s19 = smov [#allocation7]   ;;  %s26_s16 = int_to_ptr.vmem [resolvable:$true] %s25_s16 }
   0xc   :  { %28 = dma.hbm_to_vmem [thread:$0]  %s24_s1, 128, %s26_s16, [#allocation3]  }
   0xd   :  { %s47_s20 = sshll.u32 %s613_s19, 4  ;;  %s68_s23 = sshll.u32 %s685_s4, 4  ;;  %s48_s20 = int_to_ptr.vmem [resolvable:$true] %s47_s20  ;;  %s69_s23 = int_to_ptr.hbm [resolvable:$true] %s68_s23 }
   0xe   :  { %50 = dma.hbm_to_vmem [thread:$0]  %s46_s3, 128, %s48_s20, [#allocation6]  }
   0xf   :  { %s614_s0 = smov [#allocation10]  }
  0x10   :  { %s70_s24 = sshll.u32 %s614_s0, 4  ;;  %s71_s24 = int_to_ptr.vmem [resolvable:$true] %s70_s24 }
  0x11   :  { %76 = dma.hbm_to_vmem [thread:$0]  %s69_s23, 8192, %s71_s24, [#allocation9], %s610_s11, %s610_s11, %s611_s12  }
  0x12   :  { %598 = dma.done.wait [#allocation3], 128  }
  0x13   :  { %599 = vsyncadd [#allocation3], 4294967168 }
  0x14   :  { %600 = dma.done.wait [#allocation6], 256  }
  0x15   :  { %601 = vsyncadd [#allocation6], 4294967040 }
  0x16   :  { %602 = dma.done.wait [#allocation9], 9216  }
  0x17   :  { %603 = vsyncadd [#allocation9], 4294958080  ;;  %v169_v0 = vld [vmem:[#allocation10 + $0x1e0] sm:$0xff]  ;;  %v170_v1 = vld [vmem:[#allocation10 + $0x1e8] sm:$0xff]  ;;  %vm253_vm0 = vcmask 130048   ;;  %s390_s28 = sshll.u32 %s688_s7, 4  ;;  %s391_s28 = int_to_ptr.hbm [resolvable:$true] %s390_s28 }
  0x18   :  { %v171_v2 = vld [vmem:[#allocation10 + $0x1f0] sm:$0xff]  ;;  %173 = vmatpush.msra.mxu0 %v169_v0  ;;  %193 = vmatpush.msra.mxu1 %v170_v1  ;;  %v172_v3 = vld [vmem:[#allocation10 + $0x1f8] sm:$0xff]  ;;  %v165_v4 = vld [vmem:[#allocation10 + $0x1c0] sm:$0xff]  ;;  %s616_s29 = smov [#allocation11]   ;;  %s379_s10 = sshll.u32 %s687_s6, 4  ;;  %s380_s10 = int_to_ptr.hbm [resolvable:$true] %s379_s10 }
  0x19   :  { %v166_v5 = vld [vmem:[#allocation10 + $0x1c8] sm:$0xff]  ;;  %213 = vmatpush.msra.mxu2 %v171_v2  ;;  %233 = vmatpush.msra.mxu3 %v172_v3  ;;  %v167_v6 = vld [vmem:[#allocation10 + $0x1d0] sm:$0xff]  ;;  %v168_v7 = vld [vmem:[#allocation10 + $0x1d8] sm:$0xff]  ;;  %s377_s30 = sshll.u32 %s616_s29, 4  ;;  %s378_s30 = int_to_ptr.vmem [resolvable:$true] %s377_s30 }
  0x1a   :  { %v161_v8 = vld [vmem:[#allocation10 + $0x1a0] sm:$0xff]  ;;  %174 = vmatpush.msra.mxu0 %v165_v4  ;;  %194 = vmatpush.msra.mxu1 %v166_v5  ;;  %v162_v9 = vld [vmem:[#allocation10 + $0x1a8] sm:$0xff]  ;;  %v163_v10 = vld [vmem:[#allocation10 + $0x1b0] sm:$0xff] }
  0x1b   :  { %v164_v11 = vld [vmem:[#allocation10 + $0x1b8] sm:$0xff]  ;;  %214 = vmatpush.msra.mxu2 %v167_v6  ;;  %234 = vmatpush.msra.mxu3 %v168_v7  ;;  %v157_v12 = vld [vmem:[#allocation10 + $0x180] sm:$0xff]  ;;  %v158_v13 = vld [vmem:[#allocation10 + $0x188] sm:$0xff] }
  0x1c   :  { %175 = vmatpush.msra.mxu0 %v161_v8  ;;  %195 = vmatpush.msra.mxu1 %v162_v9  ;;  %v159_v14 = vld [vmem:[#allocation10 + $0x190] sm:$0xff]  ;;  %v160_v15 = vld [vmem:[#allocation10 + $0x198] sm:$0xff]  ;;  %v153_v16 = vld [vmem:[#allocation10 + $0x160] sm:$0xff] }
  0x1d   :  { %215 = vmatpush.msra.mxu2 %v163_v10  ;;  %235 = vmatpush.msra.mxu3 %v164_v11  ;;  %v154_v17 = vld [vmem:[#allocation10 + $0x168] sm:$0xff]  ;;  %v155_v18 = vld [vmem:[#allocation10 + $0x170] sm:$0xff]  ;;  %v156_v19 = vld [vmem:[#allocation10 + $0x178] sm:$0xff] }
  0x1e   :  { %176 = vmatpush.msra.mxu0 %v157_v12  ;;  %196 = vmatpush.msra.mxu1 %v158_v13  ;;  %v149_v20 = vld [vmem:[#allocation10 + $0x140] sm:$0xff]  ;;  %v150_v21 = vld [vmem:[#allocation10 + $0x148] sm:$0xff]  ;;  %v151_v22 = vld [vmem:[#allocation10 + $0x150] sm:$0xff] }
  0x1f   :  { %216 = vmatpush.msra.mxu2 %v159_v14  ;;  %236 = vmatpush.msra.mxu3 %v160_v15  ;;  %v152_v23 = vld [vmem:[#allocation10 + $0x158] sm:$0xff]  ;;  %v145_v24 = vld [vmem:[#allocation10 + $0x120] sm:$0xff]  ;;  %v146_v25 = vld [vmem:[#allocation10 + $0x128] sm:$0xff] }
  0x20   :  { %177 = vmatpush.msra.mxu0 %v153_v16  ;;  %197 = vmatpush.msra.mxu1 %v154_v17  ;;  %v147_v26 = vld [vmem:[#allocation10 + $0x130] sm:$0xff]  ;;  %v148_v27 = vld [vmem:[#allocation10 + $0x138] sm:$0xff]  ;;  %v141_v28 = vld [vmem:[#allocation10 + $0x100] sm:$0xff] }
  0x21   :  { %217 = vmatpush.msra.mxu2 %v155_v18  ;;  %237 = vmatpush.msra.mxu3 %v156_v19  ;;  %v142_v29 = vld [vmem:[#allocation10 + $0x108] sm:$0xff]  ;;  %v143_v30 = vld [vmem:[#allocation10 + $0x110] sm:$0xff]  ;;  %v144_v31 = vld [vmem:[#allocation10 + $0x118] sm:$0xff] }
  0x22   :  { %178 = vmatpush.msra.mxu0 %v149_v20  ;;  %198 = vmatpush.msra.mxu1 %v150_v21  ;;  %v137_v32 = vld [vmem:[#allocation10 + $0xe0] sm:$0xff]  ;;  %v138_v33 = vld [vmem:[#allocation10 + $0xe8] sm:$0xff]  ;;  %v139_v34 = vld [vmem:[#allocation10 + $0xf0] sm:$0xff] }
  0x23   :  { %218 = vmatpush.msra.mxu2 %v151_v22  ;;  %238 = vmatpush.msra.mxu3 %v152_v23  ;;  %v140_v35 = vld [vmem:[#allocation10 + $0xf8] sm:$0xff]  ;;  %v133_v36 = vld [vmem:[#allocation10 + $0xc0] sm:$0xff]  ;;  %v134_v37 = vld [vmem:[#allocation10 + $0xc8] sm:$0xff] }
  0x24   :  { %179 = vmatpush.msra.mxu0 %v145_v24  ;;  %199 = vmatpush.msra.mxu1 %v146_v25  ;;  %v135_v38 = vld [vmem:[#allocation10 + $0xd0] sm:$0xff]  ;;  %v136_v39 = vld [vmem:[#allocation10 + $0xd8] sm:$0xff]  ;;  %v129_v40 = vld [vmem:[#allocation10 + $0xa0] sm:$0xff] }
  0x25   :  { %219 = vmatpush.msra.mxu2 %v147_v26  ;;  %239 = vmatpush.msra.mxu3 %v148_v27  ;;  %v130_v41 = vld [vmem:[#allocation10 + $0xa8] sm:$0xff]  ;;  %v131_v42 = vld [vmem:[#allocation10 + $0xb0] sm:$0xff]  ;;  %v132_v43 = vld [vmem:[#allocation10 + $0xb8] sm:$0xff] }
  0x26   :  { %180 = vmatpush.msra.mxu0 %v141_v28  ;;  %200 = vmatpush.msra.mxu1 %v142_v29  ;;  %v125_v44 = vld [vmem:[#allocation10 + $0x80] sm:$0xff]  ;;  %v126_v45 = vld [vmem:[#allocation10 + $0x88] sm:$0xff]  ;;  %v127_v46 = vld [vmem:[#allocation10 + $0x90] sm:$0xff] }
  0x27   :  { %220 = vmatpush.msra.mxu2 %v143_v30  ;;  %240 = vmatpush.msra.mxu3 %v144_v31  ;;  %v128_v47 = vld [vmem:[#allocation10 + $0x98] sm:$0xff]  ;;  %v121_v48 = vld [vmem:[#allocation10 + $0x60] sm:$0xff]  ;;  %v122_v49 = vld [vmem:[#allocation10 + $0x68] sm:$0xff] }
  0x28   :  { %181 = vmatpush.msra.mxu0 %v137_v32  ;;  %201 = vmatpush.msra.mxu1 %v138_v33  ;;  %v123_v50 = vld [vmem:[#allocation10 + $0x70] sm:$0xff]  ;;  %v124_v51 = vld [vmem:[#allocation10 + $0x78] sm:$0xff]  ;;  %v117_v52 = vld [vmem:[#allocation10 + $0x40] sm:$0xff] }
  0x29   :  { %221 = vmatpush.msra.mxu2 %v139_v34  ;;  %241 = vmatpush.msra.mxu3 %v140_v35  ;;  %v118_v53 = vld [vmem:[#allocation10 + $0x48] sm:$0xff]  ;;  %v119_v54 = vld [vmem:[#allocation10 + $0x50] sm:$0xff]  ;;  %v120_v55 = vld [vmem:[#allocation10 + $0x58] sm:$0xff] }
  0x2a   :  { %182 = vmatpush.msra.mxu0 %v133_v36  ;;  %202 = vmatpush.msra.mxu1 %v134_v37  ;;  %v113_v56 = vld [vmem:[#allocation10 + $0x20] sm:$0xff]  ;;  %v114_v57 = vld [vmem:[#allocation10 + $0x28] sm:$0xff]  ;;  %v115_v58 = vld [vmem:[#allocation10 + $0x30] sm:$0xff] }
  0x2b   :  { %222 = vmatpush.msra.mxu2 %v135_v38  ;;  %242 = vmatpush.msra.mxu3 %v136_v39  ;;  %v116_v59 = vld [vmem:[#allocation10 + $0x38] sm:$0xff]  ;;  %v109_v60 = vld [vmem:[#allocation10] sm:$0xff]  ;;  %v110_v61 = vld [vmem:[#allocation10 + $0x8] sm:$0xff] }
  0x2c   :  { %183 = vmatpush.msra.mxu0 %v129_v40  ;;  %203 = vmatpush.msra.mxu1 %v130_v41  ;;  %v111_v62 = vld [vmem:[#allocation10 + $0x10] sm:$0xff]  ;;  %v112_v63 = vld [vmem:[#allocation10 + $0x18] sm:$0xff]  ;;  %v104_v1 = vld [vmem:[#allocation8 + $0x20] sm:$0xff] }
  0x2d   :  { %223 = vmatpush.msra.mxu2 %v131_v42  ;;  %243 = vmatpush.msra.mxu3 %v132_v43  ;;  %v108_v0 = vld [vmem:[#allocation5] sm:$0xff]  ;;  %v105_v2 = vld [vmem:[#allocation8 + $0x28] sm:$0xff]  ;;  %v107_v4 = vld [vmem:[#allocation8 + $0x38] sm:$0xff] }
  0x2e   :  { %184 = vmatpush.msra.mxu0 %v125_v44  ;;  %204 = vmatpush.msra.mxu1 %v126_v45  ;;  %v106_v3 = vld [vmem:[#allocation8 + $0x30] sm:$0xff]  ;;  %v100_v5 = vld [vmem:[#allocation8] sm:$0xff]  ;;  %v101_v6 = vld [vmem:[#allocation8 + $0x8] sm:$0xff] }
  0x2f   :  { %224 = vmatpush.msra.mxu2 %v127_v46  ;;  %244 = vmatpush.msra.mxu3 %v128_v47  ;;  %v102_v7 = vld [vmem:[#allocation8 + $0x10] sm:$0xff]  ;;  %v103_v8 = vld [vmem:[#allocation8 + $0x18] sm:$0xff]  ;;  %v99_v9 = vld [vmem:[#allocation2] sm:$0xff] }
  0x30   :  { %185 = vmatpush.msra.mxu0 %v121_v48  ;;  %205 = vmatpush.msra.mxu1 %v122_v49  ;;  %v337_v12 = vld [vmem:[%s686_s5] sm:$0xf]  ;;  %v364_v39 = vld [vmem:[#allocation7] sm:$0xff]  ;;  %s615_s5 = smov [#allocation12]  }
  0x31   :  { %225 = vmatpush.msra.mxu2 %v123_v50  ;;  %245 = vmatpush.msra.mxu3 %v124_v51  ;;  %v339_v15 = vperm.slane %v337_v12, 0  ;;  %v340_v16 = vperm.slane %v337_v12, 1  ;;  %v341_v25 = vperm.slane %v337_v12, 2  ;;  %v342_v26 = vperm.slane %v337_v12, 3  ;;  %s388_s25 = sshll.u32 %s615_s5, 4  ;;  %s389_s25 = int_to_ptr.vmem [resolvable:$true] %s388_s25 }
  0x32   :  { %186 = vmatpush.msra.mxu0 %v117_v52  ;;  %206 = vmatpush.msra.mxu1 %v118_v53 }
  0x33   :  { %226 = vmatpush.msra.mxu2 %v119_v54  ;;  %246 = vmatpush.msra.mxu3 %v120_v55 }
  0x34   :  { %187 = vmatpush.msra.mxu0 %v113_v56  ;;  %207 = vmatpush.msra.mxu1 %v114_v57 }
  0x35   :  { %227 = vmatpush.msra.mxu2 %v115_v58  ;;  %247 = vmatpush.msra.mxu3 %v116_v59 }
  0x36   :  { %188 = vmatpush.msra.mxu0 %v109_v60  ;;  %208 = vmatpush.msra.mxu1 %v110_v61 }
  0x37   :  { %228 = vmatpush.msra.mxu2 %v111_v62  ;;  %248 = vmatpush.msra.mxu3 %v112_v63 }
  0x38   :  { %189 = vmatmul.f32.vlgmr.msra.gmra.mxu0 %v108_v0  ;;  %209 = vmatmul.f32.vlgmr.msra.gmra.mxu1 %v108_v0 }
  0x39   :  { %229 = vmatmul.f32.vlgmr.msra.gmra.mxu2 %v108_v0  ;;  %249 = vmatmul.f32.vlgmr.msra.gmra.mxu3 %v108_v0 }
  0x3a   :  { %271 = vmatpush.msrb.mxu0 %v104_v1  ;;  %291 = vmatpush.msrb.mxu1 %v105_v2 }
  0x3b   :  { %311 = vmatpush.msrb.mxu2 %v106_v3  ;;  %331 = vmatpush.msrb.mxu3 %v107_v4 }
  0x3c   :  { %272 = vmatpush.msrb.mxu0 %v100_v5  ;;  %292 = vmatpush.msrb.mxu1 %v101_v6 }
  0x3d   :  { %312 = vmatpush.msrb.mxu2 %v102_v7  ;;  %332 = vmatpush.msrb.mxu3 %v103_v8 }
  0x40   :  { %407 = vmatmul.msk.f32.vlgmr.msrb.gmra.mxu0 %vm253_vm0, %v99_v9  ;;  %408 = vmatmul.msk.f32.vlgmr.msrb.gmra.mxu1 %vm253_vm0, %v99_v9 }
  0x41   :  { %409 = vmatmul.msk.f32.vlgmr.msrb.gmra.mxu2 %vm253_vm0, %v99_v9  ;;  %410 = vmatmul.msk.f32.vlgmr.msrb.gmra.mxu3 %vm253_vm0, %v99_v9 }
  0xb5   :  { %v190_v10 = vpop.f32.mrf.mxu0  ;;  %v210_v11 = vpop.f32.mrf.mxu1 }
  0xbc   :  { %v230_v13 = vpop.f32.mrf.mxu2  ;;  %v250_v14 = vpop.f32.mrf.mxu3 }
  0xbd   :  { %v274_v17 = vpop.f32.mrf.mxu0  ;;  %v294_v18 = vpop.f32.mrf.mxu1 }
  0xbe   :  { %v275_v19 = vadd.f32 %v274_v17, %v190_v10  ;;  %v295_v20 = vadd.f32 %v294_v18, %v210_v11 }
  0xc0   :  { %v347_v21 = vadd.f32 %v339_v15, %v275_v19  ;;  %v348_v22 = vadd.f32 %v340_v16, %v295_v20 }
  0xc2   :  { %v351_v23 = vmul.f32 0.5, %v347_v21  ;;  %v355_v24 = vmul.f32 0.5, %v348_v22 }
  0xc4   :  { %420 = vtanh.f32 %v351_v23  ;;  %v314_v27 = vpop.f32.mrf.mxu2  ;;  %v334_v28 = vpop.f32.mrf.mxu3 }
  0xc5   :  { %422 = vtanh.f32 %v355_v24  ;;  %v315_v29 = vadd.f32 %v314_v27, %v230_v13  ;;  %v335_v30 = vadd.f32 %v334_v28, %v250_v14 }
  0xc7   :  { %v349_v31 = vadd.f32 %v341_v25, %v315_v29  ;;  %v350_v32 = vadd.f32 %v342_v26, %v335_v30 }
  0xc9   :  { %424 = vtanh.f32 %v349_v31  ;;  %v360_v33 = vmul.f32 0.5, %v350_v32 }
  0xca   :  { %v421_v34 = vpop.eup %420 }
  0xcb   :  { %v423_v35 = vpop.eup %422  ;;  %v353_v36 = vmul.f32 0.5, %v421_v34  ;;  %426 = vtanh.f32 %v360_v33 }
  0xcc   :  { %v357_v37 = vmul.f32 0.5, %v423_v35 }
  0xcd   :  { %v354_v38 = vadd.f32 0.5, %v353_v36 }
  0xce   :  { %v358_v40 = vadd.f32 0.5, %v357_v37 }
  0xcf   :  { %v425_v41 = vpop.eup %424 }
  0xd0   :  { %v365_v42 = vmul.f32 %v364_v39, %v358_v40  ;;  %v366_v43 = vmul.f32 %v425_v41, %v354_v38 }
  0xd1   :  { %v427_v44 = vpop.eup %426 }
  0xd2   :  { %v367_v45 = vadd.f32 %v366_v43, %v365_v42  ;;  %v362_v46 = vmul.f32 0.5, %v427_v44 }
  0xd4   :  { %370 = vst [vmem:[#allocation12] sm:$0xff] %v367_v45  ;;  %428 = vtanh.f32 %v367_v45  ;;  %v363_v47 = vadd.f32 0.5, %v362_v46 }
  0xd5   :  { %393 = dma.vmem_to_hbm [thread:$0]  %s389_s25, 128, %s391_s28, [#allocation13]  }
  0xda   :  { %v429_v48 = vpop.eup %428 }
  0xdb   :  { %v369_v49 = vmul.f32 %v429_v48, %v363_v47 }
  0xdd   :  { %371 = vst [vmem:[#allocation11] sm:$0xff] %v369_v49 }
  0xde   :  { %382 = dma.vmem_to_hbm [thread:$0]  %s378_s30, 128, %s380_s10, [#allocation4]  }
  0xdf   :  { %604 = dma.done.wait [#allocation4], 128  }
  0xe0   :  { %605 = vsyncadd [#allocation4], 4294967168 }
  0xe1   :  { %606 = dma.done.wait [#allocation13], 128  }
  0xe2   :  { %607 = vsyncadd [#allocation13], 4294967168 }
  0xe3   :  { %402 = vsyncpa [#allocation3], 1 }
  0xe4   :  { %403 = vsyncpa [#allocation6], 1 }
  0xe5   :  { %404 = vsyncpa [#allocation9], 1 }
  0xe6   :  { %405 = vsyncpa [#allocation4], 1 }
  0xe7   :  { %406 = vsyncpa [#allocation13], 1 }

</bundles_post_ra>
